<compile_context>
chip_gen: v5e
topology: v5e:2x2
jax: 0.10.0
libtpu: 0.0.40
codegen_flags: <defaults>
</compile_context>

<pallas_src>
import functools
import math

import jax
import jax.numpy as jnp
from jax.experimental import pallas as pl
from jax.experimental.pallas import tpu as pltpu


def _cdiv(a, b):
    return -(-a // b)


def _round_up(a, b):
    return _cdiv(a, b) * b


def make_positional_encoding(d_model, max_len, dtype=jnp.float32):
    """Build the (max_len, 1, d_model) PE buffer, matching the PyTorch init."""
    assert d_model % 2 == 0, "d_model must be even (as in the PyTorch module)"
    pos = jnp.arange(max_len, dtype=jnp.float32)[:, None]                # (L, 1)
    div_term = jnp.exp(
        jnp.arange(0, d_model, 2, dtype=jnp.float32)
        * (-math.log(10000.0) / d_model)
    )                                                                    # (D/2,)
    angles = pos * div_term                                              # (L, D/2)
    pe = jnp.zeros((max_len, d_model), dtype=jnp.float32)
    pe = pe.at[:, 0::2].set(jnp.sin(angles))
    pe = pe.at[:, 1::2].set(jnp.cos(angles))
    # unsqueeze(0).transpose(0, 1)  ->  (max_len, 1, d_model)
    return pe[:, None, :].astype(dtype)


# ----------------------------------------------------------------------------
# Kernels
# ----------------------------------------------------------------------------
def _pos_enc_kernel_3d(x_ref, pe_ref, o_ref):
    # x: (seq_tile, batch, d_model); pe: (seq_tile, 1, d_model)
    # pe broadcasts over the batch (sublane) axis.
    o_ref[...] = x_ref[...] + pe_ref[...]


def _pos_enc_kernel_2d(x_ref, pe_ref, o_ref, *, batch):
    # x: (seq_tile, batch*d_model); pe: (seq_tile, d_model)
    # replicate pe across the `batch` copies that are laid out along lanes.
    o_ref[...] = x_ref[...] + jnp.tile(pe_ref[...], (1, batch))


# ----------------------------------------------------------------------------
# Tiling heuristics
# ----------------------------------------------------------------------------
def _vmem_budget():
    """(live double-buffered block budget, compiler vmem_limit) in bytes."""
    try:
        cap = int(pltpu.get_tpu_info().vmem_capacity_bytes)
    except Exception:
        cap = 64 * 1024 * 1024  # conservative: v7x has 64 MiB per TensorCore
    if cap > 96 * 1024 * 1024:
        # v5e / v6e class (128 MiB VMEM per core): plenty of headroom.
        return 64 * 1024 * 1024, 100 * 1024 * 1024
    # v7x class (64 MiB per core): leave room for Mosaic internal scratch.
    return 28 * 1024 * 1024, 48 * 1024 * 1024


def _pick_seq_tile(seq_len, x_row_bytes, per_row_live_bytes, budget_bytes, multiple):
    """Pick the sequence-tile size (rows per grid step)."""
    # Largest tile whose double-buffered blocks fit the budget.
    budget_tile = max(1, budget_bytes // per_row_live_bytes)
    # Aim for ~16 grid steps (pipelining hides prologue/epilogue, balances the
    # two v7x TensorCores) ...
    target_tile = _cdiv(seq_len, 16)
    # ... but keep each x block >= ~1 MiB so DMAs stay efficient.
    min_tile = _cdiv(1 << 20, x_row_bytes)
    tile = min(budget_tile, max(target_tile, min_tile))
    tile = max(1, min(tile, seq_len))
    # The 2D layout needs the sublane (seq) tile to be a multiple of 8 unless
    # it spans the whole sequence.
    if multiple > 1 and tile < seq_len:
        tile = min(seq_len, _round_up(tile, multiple))
    # Prefer an even step count (megacore balance on v7x).
    steps = _cdiv(seq_len, tile)
    if steps > 1 and steps % 2 == 1:
        tile2 = _cdiv(seq_len, steps + 1)
        if multiple > 1:
            tile2 = _round_up(tile2, multiple)
        tile2 = max(1, min(tile2, seq_len))
        if _cdiv(seq_len, tile2) % 2 == 0:
            tile = tile2
    return tile


# ----------------------------------------------------------------------------
# Forward wrapper
# ----------------------------------------------------------------------------
def positional_encoding_forward(x, pe, *, donate_x=False):
    """y[s, b, :] = x[s, b, :] + pe[s, 0, :]  (PE broadcast over batch)."""
    seq_len, batch, d_model = x.shape
    assert pe.ndim == 3 and pe.shape[1] == 1 and pe.shape[2] == d_model
    assert pe.shape[0] >= seq_len, "sequence length exceeds max_len"

    # self.PE[:x.size(0), :] -- static slice; add runs natively in x.dtype.
    pe_sl = pe[:seq_len].astype(x.dtype)

    itemsize = jnp.dtype(x.dtype).itemsize
    budget, vmem_limit = _vmem_budget()

    # Per-seq-row padded footprint of the blocks for each layout.
    x_row_2d = _round_up(batch * d_model, 128) * itemsize
    pe_row_2d = _round_up(d_model, 128) * itemsize
    x_row_3d = _round_up(batch, 8) * _round_up(d_model, 128) * itemsize
    pe_row_3d = 8 * _round_up(d_model, 128) * itemsize

    # 2D layout (seq, batch*d_model) when batch is not sublane-aligned: makes
    # sublanes = seq tile (8-aligned) and lanes = batch*d_model (dense stores).
    # Only if the minimum 8-row tile still fits the VMEM budget.
    live_2d_min = 8 * (4 * x_row_2d + 2 * pe_row_2d)
    use_2d = (batch % 8 != 0) and (live_2d_min <= budget)

    if use_2d:
        x_in = x.reshape(seq_len, batch * d_model)
        pe_in = pe_sl.reshape(seq_len, d_model)
        x_row, pe_row, multiple = x_row_2d, pe_row_2d, 8
        kernel = functools.partial(_pos_enc_kernel_2d, batch=batch)
        out_shape = jax.ShapeDtypeStruct((seq_len, batch * d_model), x.dtype)
    else:
        x_in = x
        pe_in = pe_sl
        x_row, pe_row, multiple = x_row_3d, pe_row_3d, 1
        kernel = _pos_enc_kernel_3d
        out_shape = jax.ShapeDtypeStruct(x.shape, x.dtype)

    # x block + out block (each double-buffered) + pe block (double-buffered).
    per_row_live = 4 * x_row + 2 * pe_row
    seq_tile = _pick_seq_tile(seq_len, x_row, per_row_live, budget, multiple)
    grid = (_cdiv(seq_len, seq_tile),)

    if use_2d:
        in_specs = [
            pl.BlockSpec((seq_tile, batch * d_model), lambda i: (i, 0)),
            pl.BlockSpec((seq_tile, d_model), lambda i: (i, 0)),
        ]
        out_specs = pl.BlockSpec((seq_tile, batch * d_model), lambda i: (i, 0))
    else:
        in_specs = [
            pl.BlockSpec((seq_tile, batch, d_model), lambda i: (i, 0, 0)),
            pl.BlockSpec((seq_tile, 1, d_model), lambda i: (i, 0, 0)),
        ]
        out_specs = pl.BlockSpec((seq_tile, batch, d_model), lambda i: (i, 0, 0))

    # Advisory cost: one add per element, pure HBM streaming.
    x_bytes = x.size * itemsize
    pe_bytes = pe_sl.size * jnp.dtype(pe_sl.dtype).itemsize
    cost = pl.CostEstimate(
        flops=x.size, transcendentals=0, bytes_accessed=2 * x_bytes + pe_bytes
    )

    call_kwargs = {}
    if donate_x:
        # Reuse x's HBM buffer for the output (only if the caller no longer
        # needs x).
        call_kwargs["input_output_aliases"] = {0: 0}

    out = pl.pallas_call(
        kernel,
        out_shape=out_shape,
        grid=grid,
        in_specs=in_specs,
        out_specs=out_specs,
        compiler_params=pltpu.CompilerParams(
            dimension_semantics=("parallel",),
            vmem_limit_bytes=vmem_limit,
        ),
        cost_estimate=cost,
        **call_kwargs,
    )(x_in, pe_in)

    if use_2d:
        out = out.reshape(seq_len, batch, d_model)
    return out


if __name__ == "__main__":
    key = jax.random.PRNGKey(0)
    k1, k2 = jax.random.split(key)

    # Small shapes consistent with the module's forward: x is
    # (seq_len, batch, d_model) with seq_len <= max_len.
    d_model, max_len = 128, 32
    pe = make_positional_encoding(d_model, max_len)  # (max_len, 1, d_model)

    # Case 1: sublane-aligned batch -> 3D path.
    seq_len, batch = 16, 8
    x = jax.random.normal(k1, (seq_len, batch, d_model), dtype=jnp.float32)
    out = positional_encoding_forward(x, pe)
    jax.block_until_ready(out)
    ref = x + pe[:seq_len]
    assert out.shape == ref.shape
    assert jnp.allclose(out, ref, atol=1e-6, rtol=1e-6), "mismatch (3D path)"

    # Case 2: small / ragged batch -> 2D lane-dense path.
    seq_len2, batch2 = 10, 3
    x2 = jax.random.normal(k2, (seq_len2, batch2, d_model), dtype=jnp.float32)
    out2 = positional_encoding_forward(x2, pe)
    jax.block_until_ready(out2)
    ref2 = x2 + pe[:seq_len2]
    assert out2.shape == ref2.shape
    assert jnp.allclose(out2, ref2, atol=1e-6, rtol=1e-6), "mismatch (2D path)"

    print("KERNEL_OK")
</pallas_src>

<mosaic_0001>
module attributes {stable_mosaic.version = 11 : i64} {
  func.func @_pos_enc_kernel_3d(%arg0: i32, %arg1: memref<16x8x128xf32, #tpu.memory_space<vmem>>, %arg2: memref<16x1x128xf32, #tpu.memory_space<vmem>>, %arg3: memref<16x8x128xf32, #tpu.memory_space<vmem>>) attributes {dimension_semantics = [#tpu.dimension_semantics<parallel>], iteration_bounds = array<i64: 1>, scalar_prefetch = 0 : i64, scratch_operands = 0 : i64, tpu.core_type = #tpu.core_type<tc>, window_params = [{transform_indices = @transform_0, window_bounds = array<i64: 16, 8, 128>}, {transform_indices = @transform_1, window_bounds = array<i64: 16, 1, 128>}, {transform_indices = @transform_2, window_bounds = array<i64: 16, 8, 128>}]} {
    %c0 = arith.constant 0 : index
    %c0_0 = arith.constant 0 : index
    %c0_1 = arith.constant 0 : index
    %0 = vector.load %arg1[%c0, %c0_0, %c0_1] : memref<16x8x128xf32, #tpu.memory_space<vmem>>, vector<16x8x128xf32>
    %c0_2 = arith.constant 0 : index
    %c0_3 = arith.constant 0 : index
    %c0_4 = arith.constant 0 : index
    %1 = vector.load %arg2[%c0_2, %c0_3, %c0_4] : memref<16x1x128xf32, #tpu.memory_space<vmem>>, vector<16x1x128xf32>
    %2 = vector.broadcast %1 : vector<16x1x128xf32> to vector<16x8x128xf32>
    %3 = arith.addf %0, %2 : vector<16x8x128xf32>
    %c0_5 = arith.constant 0 : index
    %c0_6 = arith.constant 0 : index
    %c0_7 = arith.constant 0 : index
    %4 = vector.load %arg3[%c0_5, %c0_6, %c0_7] : memref<16x8x128xf32, #tpu.memory_space<vmem>>, vector<16x8x128xf32>
    tpu.vector_store %arg3[%c0_5, %c0_6, %c0_7], %3 {strides = array<i32>} : memref<16x8x128xf32, #tpu.memory_space<vmem>>, vector<16x8x128xf32>,
    return
  }
  func.func @transform_0(%arg0: i32) -> (i32, i32, i32) {
    %c0_i32 = arith.constant 0 : i32
    %c0_i32_0 = arith.constant 0 : i32
    %c0_i32_1 = arith.constant 0 : i32
    return %arg0, %c0_i32, %c0_i32_0 : i32, i32, i32
  }
  func.func @transform_1(%arg0: i32) -> (i32, i32, i32) {
    %c0_i32 = arith.constant 0 : i32
    %c0_i32_0 = arith.constant 0 : i32
    %c0_i32_1 = arith.constant 0 : i32
    return %arg0, %c0_i32, %c0_i32_0 : i32, i32, i32
  }
  func.func @transform_2(%arg0: i32) -> (i32, i32, i32) {
    %c0_i32 = arith.constant 0 : i32
    %c0_i32_0 = arith.constant 0 : i32
    %c0_i32_1 = arith.constant 0 : i32
    return %arg0, %c0_i32, %c0_i32_0 : i32, i32, i32
  }
}

</mosaic_0001>

<bundles_post_ra>
// kernel: tpu_custom_call.1
= control target key start
LH: loop header
LB: loop body
LE: loop exit
PB: predicated region body
PF: predicated region fallthrough
CT: control target
= control target key end

     0   :  { %7 = vsyncpa [#allocation3], 0  ;;  %s321_s0 = inlined_call_operand.hbm [shape: f32[16,8,128], index: 0, kind: input, shape index: {}]   ;;  %s322_s1 = inlined_call_operand.hbm [shape: f32[16,1,128], index: 1, kind: input, shape index: {}]   ;;  %s323_s2 = inlined_call_operand.hbm [shape: f32[16,8,128], index: 2, kind: output, shape index: {}]  }
   0x1   :  { %8 = vsyncpa [#allocation6], 0 }
   0x2   :  { %9 = vsyncpa [#allocation4], 0  ;;  %s14_s11 = sshll.u32 %s321_s0, 4  ;;  %s277_s12 = smov [#allocation2]   ;;  %s15_s11 = int_to_ptr.hbm [resolvable:$true] %s14_s11 }
   0x3   :  { %s16_s13 = sshll.u32 %s277_s12, 4  ;;  %s27_s16 = sshll.u32 %s322_s1, 4  ;;  %s17_s13 = int_to_ptr.vmem [resolvable:$true] %s16_s13  ;;  %s28_s16 = int_to_ptr.hbm [resolvable:$true] %s27_s16 }
   0x4   :  { %s278_s17 = smov 128   ;;  %s279_s18 = smov 8  }
   0x5   :  { %22 = dma.hbm_to_vmem [thread:$0]  %s15_s11, 2048, %s17_s13, [#allocation3], %s278_s17, %s278_s17, %s279_s18  }
   0x6   :  { %s280_s19 = smov [#allocation5]   ;;  %s281_s21 = smov 16  }
   0x7   :  { %s29_s20 = sshll.u32 %s280_s19, 4  ;;  %s282_s0 = smov 1   ;;  %s30_s20 = int_to_ptr.vmem [resolvable:$true] %s29_s20 }
   0x8   :  { %35 = dma.hbm_to_vmem [thread:$0]  %s28_s16, 256, %s30_s20, [#allocation6], %s281_s21, %s281_s21, %s282_s0  }
   0x9   :  { %271 = dma.done.wait [#allocation3], 2048  }
   0xa   :  { %272 = vsyncadd [#allocation3], 4294965248 }
   0xb   :  { %273 = dma.done.wait [#allocation6], 256  }
   0xc   :  { %274 = vsyncadd [#allocation6], 4294967040  ;;  %v44_v0 = vld [vmem:[#allocation2] sm:$0xff]  ;;  %v45_v2 = vld [vmem:[#allocation2 + $0x8] sm:$0xff]  ;;  %s162_s23 = sshll.u32 %s323_s2, 4  ;;  %s283_s24 = smov [#allocation7]   ;;  %s163_s23 = int_to_ptr.hbm [resolvable:$true] %s162_s23 }
   0xd   :  { %v183_v1 = vld [vmem:[#allocation5] ss:$0 sm:$0xff]  ;;  %v184_v3 = vld [vmem:[#allocation5 + $0x1] ss:$0 sm:$0xff]  ;;  %v46_v5 = vld [vmem:[#allocation2 + $0x10] sm:$0xff]  ;;  %s311_s25 = sshll.u32 %s283_s24, 4  ;;  %s161_s25 = int_to_ptr.vmem [resolvable:$true] %s311_s25 }
   0xe   :  { %v124_v4 = vadd.f32 %v183_v1, %v44_v0  ;;  %v185_v6 = vld [vmem:[#allocation5 + $0x2] ss:$0 sm:$0xff]  ;;  %v125_v7 = vadd.f32 %v184_v3, %v45_v2  ;;  %v47_v8 = vld [vmem:[#allocation2 + $0x18] sm:$0xff]  ;;  %v186_v9 = vld [vmem:[#allocation5 + $0x3] ss:$0 sm:$0xff] }
   0xf   :  { %v126_v10 = vadd.f32 %v185_v6, %v46_v5  ;;  %v48_v11 = vld [vmem:[#allocation2 + $0x20] sm:$0xff]  ;;  %v127_v13 = vadd.f32 %v186_v9, %v47_v8  ;;  %v49_v14 = vld [vmem:[#allocation2 + $0x28] sm:$0xff]  ;;  %v50_v17 = vld [vmem:[#allocation2 + $0x30] sm:$0xff] }
  0x10   :  { %140 = vst [vmem:[#allocation7] sm:$0xff] %v124_v4  ;;  %v187_v12 = vld [vmem:[#allocation5 + $0x4] ss:$0 sm:$0xff]  ;;  %v188_v15 = vld [vmem:[#allocation5 + $0x5] ss:$0 sm:$0xff]  ;;  %v51_v20 = vld [vmem:[#allocation2 + $0x38] sm:$0xff] }
  0x11   :  { %141 = vst [vmem:[#allocation7 + $0x8] sm:$0xff] %v125_v7  ;;  %v128_v16 = vadd.f32 %v187_v12, %v48_v11  ;;  %v189_v18 = vld [vmem:[#allocation5 + $0x6] ss:$0 sm:$0xff]  ;;  %v129_v19 = vadd.f32 %v188_v15, %v49_v14  ;;  %v190_v21 = vld [vmem:[#allocation5 + $0x7] ss:$0 sm:$0xff]  ;;  %v53_v26 = vld [vmem:[#allocation2 + $0x48] sm:$0xff] }
  0x12   :  { %142 = vst [vmem:[#allocation7 + $0x10] sm:$0xff] %v126_v10  ;;  %v130_v22 = vadd.f32 %v189_v18, %v50_v17  ;;  %v52_v23 = vld [vmem:[#allocation2 + $0x40] sm:$0xff]  ;;  %v191_v24 = vld [vmem:[#allocation5 + $0x8] ss:$0 sm:$0xff]  ;;  %v131_v25 = vadd.f32 %v190_v21, %v51_v20  ;;  %v192_v27 = vld [vmem:[#allocation5 + $0x9] ss:$0 sm:$0xff] }
  0x13   :  { %143 = vst [vmem:[#allocation7 + $0x18] sm:$0xff] %v127_v13  ;;  %v132_v28 = vadd.f32 %v191_v24, %v52_v23  ;;  %v54_v29 = vld [vmem:[#allocation2 + $0x50] sm:$0xff]  ;;  %v193_v30 = vld [vmem:[#allocation5 + $0xa] ss:$0 sm:$0xff]  ;;  %v133_v31 = vadd.f32 %v192_v27, %v53_v26  ;;  %v55_v32 = vld [vmem:[#allocation2 + $0x58] sm:$0xff] }
  0x14   :  { %144 = vst [vmem:[#allocation7 + $0x20] sm:$0xff] %v128_v16  ;;  %v194_v33 = vld [vmem:[#allocation5 + $0xb] ss:$0 sm:$0xff]  ;;  %v134_v34 = vadd.f32 %v193_v30, %v54_v29  ;;  %v56_v35 = vld [vmem:[#allocation2 + $0x60] sm:$0xff]  ;;  %v195_v36 = vld [vmem:[#allocation5 + $0xc] ss:$0 sm:$0xff] }
  0x15   :  { %145 = vst [vmem:[#allocation7 + $0x28] sm:$0xff] %v129_v19  ;;  %v135_v37 = vadd.f32 %v194_v33, %v55_v32  ;;  %v57_v38 = vld [vmem:[#allocation2 + $0x68] sm:$0xff]  ;;  %v136_v40 = vadd.f32 %v195_v36, %v56_v35  ;;  %v58_v41 = vld [vmem:[#allocation2 + $0x70] sm:$0xff]  ;;  %v59_v44 = vld [vmem:[#allocation2 + $0x78] sm:$0xff] }
  0x16   :  { %146 = vst [vmem:[#allocation7 + $0x30] sm:$0xff] %v130_v22  ;;  %v196_v39 = vld [vmem:[#allocation5 + $0xd] ss:$0 sm:$0xff]  ;;  %v197_v42 = vld [vmem:[#allocation5 + $0xe] ss:$0 sm:$0xff] }
  0x17   :  { %147 = vst [vmem:[#allocation7 + $0x38] sm:$0xff] %v131_v25  ;;  %v137_v43 = vadd.f32 %v196_v39, %v57_v38  ;;  %v198_v45 = vld [vmem:[#allocation5 + $0xf] ss:$0 sm:$0xff]  ;;  %v138_v46 = vadd.f32 %v197_v42, %v58_v41 }
  0x18   :  { %148 = vst [vmem:[#allocation7 + $0x40] sm:$0xff] %v132_v28  ;;  %v139_v47 = vadd.f32 %v198_v45, %v59_v44 }
  0x19   :  { %149 = vst [vmem:[#allocation7 + $0x48] sm:$0xff] %v133_v31 }
  0x1a   :  { %150 = vst [vmem:[#allocation7 + $0x50] sm:$0xff] %v134_v34 }
  0x1b   :  { %151 = vst [vmem:[#allocation7 + $0x58] sm:$0xff] %v135_v37 }
  0x1c   :  { %152 = vst [vmem:[#allocation7 + $0x60] sm:$0xff] %v136_v40 }
  0x1d   :  { %153 = vst [vmem:[#allocation7 + $0x68] sm:$0xff] %v137_v43 }
  0x1e   :  { %154 = vst [vmem:[#allocation7 + $0x70] sm:$0xff] %v138_v46 }
  0x1f   :  { %155 = vst [vmem:[#allocation7 + $0x78] sm:$0xff] %v139_v47 }
  0x20   :  { %168 = dma.vmem_to_hbm [thread:$0]  %s161_s25, 2048, %s163_s23, [#allocation4], %s278_s17, %s278_s17, %s279_s18  }
  0x21   :  { %275 = dma.done.wait [#allocation4], 2048  }
  0x22   :  { %276 = vsyncadd [#allocation4], 4294965248 }
  0x23   :  { %173 = vsyncpa [#allocation3], 1 }
  0x24   :  { %174 = vsyncpa [#allocation6], 1 }
  0x25   :  { %175 = vsyncpa [#allocation4], 1 }

</bundles_post_ra>
